<compile_context>
chip_gen: v6e
topology: v6e:2x2x1
jax: 0.10.0
libtpu: 0.0.40
codegen_flags: <defaults>
</compile_context>

<pallas_src>
import jax
import jax.numpy as jnp
from jax.experimental import pallas as pl
from jax.experimental.pallas import tpu as pltpu

# ----------------------------- model shapes (small, consistent with the module) ----------
BATCH = 2
SEQ_LEN = 16            # tokenized / padded sequence length
VOCAB_SIZE = 50         # stand-in vocab for the frozen-BERT hidden-state table
HIDDEN = 32             # args.bert_input_size
FILTER_SIZES = (2, 3, 4)
FILTER_NUM = 8          # args.filter_num
REL_EMB_DIM = 32        # args.rel_embedding_dim
CLASS_NUM = 4           # args.class_num

# ----------------------------- kernel-side padded sizes ----------------------------------
NUM_BANKS = len(FILTER_SIZES)
TOTAL_F = NUM_BANKS * FILTER_NUM           # 24 real pooled channels
FS_MAX = max(FILTER_SIZES)                 # 4 taps per im2col window
V_PAD = 128                                # one-hot / embedding-table vocab padding
LOUT_PAD = 16                              # padded #conv windows (multiple of 8)
L_PAD = 24                                 # padded time axis (>= LOUT_PAD + FS_MAX - 1)
F_PAD = 32                                 # conv output channels padded 24 -> 32
SLAB_W = 32                                # common lane width of both constant slabs
HEAD_K = F_PAD + HIDDEN + REL_EMB_DIM      # 96: head input = [pooled | pooler | x_emb]

EMB_OFF = 0                                # bf16 slab row offsets
WCONV_OFF = EMB_OFF + V_PAD                # 128
WFUSED_OFF = WCONV_OFF + FS_MAX * HIDDEN   # 256
BF16_ROWS = WFUSED_OFF + HEAD_K            # 352
BIAS_ROWS = BATCH * LOUT_PAD               # 32 rows of batch-tiled masked conv bias
BFUSED_ROW = BIAS_ROWS                     # row 32 of the f32 slab holds the fused head bias
F32_ROWS = 40

assert HIDDEN == F_PAD == SLAB_W and CLASS_NUM <= SLAB_W
assert VOCAB_SIZE <= V_PAD
assert LOUT_PAD >= SEQ_LEN - min(FILTER_SIZES) + 1 and LOUT_PAD % 8 == 0
assert L_PAD >= max(SEQ_LEN, LOUT_PAD + FS_MAX - 1) and L_PAD % 8 == 0


def bert_cnn_emb_kernel(tok_ref,       # VMEM (B, SEQ)        int32   token ids
                        pooler_ref,    # VMEM (B, H)          f32     BERT pooler_output
                        xemb_ref,      # VMEM (B, R)          f32     x_emb
                        wbf16_ref,     # VMEM (352, 32)       bf16    [emb | conv W | fused head W]
                        cf32_ref,      # VMEM (40, 32)        f32     [masked conv bias | fused head bias]
                        out_ref):      # VMEM (B, C)          f32     softmax probs
    # ---- (1) vectorized "last_hidden_state" gather: one-hot(tokens) @ emb (one MXU pass) ----
    tok = tok_ref[...]                                                       # (B, SEQ) int32
    iota_v = jax.lax.broadcasted_iota(jnp.int32, (BATCH, SEQ_LEN, V_PAD), 2)
    onehot = jnp.where(iota_v == tok[:, :, None],
                       jnp.float32(1.0), jnp.float32(0.0))                   # (B, SEQ, V_PAD)
    onehot2d = onehot.reshape(BATCH * SEQ_LEN, V_PAD).astype(jnp.bfloat16)   # (32, 128)
    emb = wbf16_ref[EMB_OFF:EMB_OFF + V_PAD, :]                              # (128, 32) bf16
    # out-of-range token ids hit zero-padded table rows (or an all-zero one-hot): bounded.
    x2d = jnp.dot(onehot2d, emb, preferred_element_type=jnp.float32)         # (32, 32) f32

    # zero-pad the time axis; padded rows only ever feed windows whose bias is -1e30.
    x3 = jnp.concatenate(
        [x2d.reshape(BATCH, SEQ_LEN, HIDDEN),
         jnp.zeros((BATCH, L_PAD - SEQ_LEN, HIDDEN), jnp.float32)], axis=1)  # (B, 24, H) f32

    # ---- (2) all three Conv2d banks as ONE flattened im2col matmul (K = FS_MAX*H = 128) ----
    xim = jnp.concatenate([x3[:, k:k + LOUT_PAD, :] for k in range(FS_MAX)], axis=-1)
    xim2d = xim.reshape(BATCH * LOUT_PAD, FS_MAX * HIDDEN).astype(jnp.bfloat16)   # (32, 128)
    w_conv = wbf16_ref[WCONV_OFF:WCONV_OFF + FS_MAX * HIDDEN, :]             # (128, 32) bf16
    conv = jnp.dot(xim2d, w_conv, preferred_element_type=jnp.float32)        # (32, 32) f32
    # additive masked bias: conv bias on valid (window, channel) pairs, -1e30 elsewhere;
    # ReLU clamps masked windows/channels to 0, so the max-pool equals the unpadded pool.
    conv = jnp.maximum(conv + cf32_ref[0:BIAS_ROWS, :], 0.0)                 # bias + ReLU
    pooled = jnp.max(conv.reshape(BATCH, LOUT_PAD, F_PAD), axis=1)           # (B, 32) f32
    # pooled[:, :24] == torch.cat of the three per-bank max-pools; cols 24..31 are 0.

    # ---- (3) cls_conv + cls_pooler + switch + cls_layer collapsed into ONE matmul ----
    # switch row order matches torch.stack((x_conv_out, emb_out, pooler_out), dim=2).
    head_in = jnp.concatenate([pooled, pooler_ref[...], xemb_ref[...]],
                              axis=-1).astype(jnp.bfloat16)                  # (B, 96)
    w_fused = wbf16_ref[WFUSED_OFF:WFUSED_OFF + HEAD_K, :]                   # (96, 32) bf16
    logits = jnp.dot(head_in, w_fused, preferred_element_type=jnp.float32)   # (B, 32)
    logits = (logits + cf32_ref[BFUSED_ROW:BFUSED_ROW + 1, :])[:, :CLASS_NUM]  # (B, C)

    # ---- (4) softmax(dim=1) ----
    m = jnp.max(logits, axis=1, keepdims=True)
    e = jnp.exp(logits - m)
    out_ref[...] = (e / jnp.sum(e, axis=1, keepdims=True)).astype(out_ref.dtype)


def bert_cnn_emb_forward(tokens, pooler_output, x_emb, bf16_slab, f32_slab):
    """One fused pallas_call; no per-forward glue ops outside the kernel."""
    vmem = pltpu.MemorySpace.VMEM
    return pl.pallas_call(
        bert_cnn_emb_kernel,
        out_shape=jax.ShapeDtypeStruct((BATCH, CLASS_NUM), jnp.float32),
        in_specs=[pl.BlockSpec(memory_space=vmem)] * 5,
        out_specs=pl.BlockSpec(memory_space=vmem),
    )(tokens, pooler_output, x_emb, bf16_slab, f32_slab)


# ------------------------------------ parameters -----------------------------------------
def init_params(key):
    """Parameters in PyTorch layouts (what the nn.Module would hold)."""
    ks = iter(jax.random.split(key, 16))

    def uniform(k, shape, fan_in):
        s = 1.0 / (fan_in ** 0.5)
        return jax.random.uniform(k, shape, jnp.float32, -s, s)

    emb_table = jax.random.normal(next(ks), (VOCAB_SIZE, HIDDEN), jnp.float32)

    conv_ws, conv_bs = [], []
    for fs in FILTER_SIZES:
        fan_in = fs * HIDDEN
        conv_ws.append(uniform(next(ks), (FILTER_NUM, 1, fs, HIDDEN), fan_in))  # Conv2d weight
        conv_bs.append(uniform(next(ks), (FILTER_NUM,), fan_in))

    w_cls_conv = uniform(next(ks), (REL_EMB_DIM, TOTAL_F), TOTAL_F)
    b_cls_conv = uniform(next(ks), (REL_EMB_DIM,), TOTAL_F)
    w_cls_pooler = uniform(next(ks), (REL_EMB_DIM, HIDDEN), HIDDEN)
    b_cls_pooler = uniform(next(ks), (REL_EMB_DIM,), HIDDEN)
    w_switch = uniform(next(ks), (1, 3), 3)                    # Linear(3, 1, bias=False)
    w_cls_layer = uniform(next(ks), (CLASS_NUM, REL_EMB_DIM), REL_EMB_DIM)
    b_cls_layer = uniform(next(ks), (CLASS_NUM,), REL_EMB_DIM)

    return (emb_table, conv_ws, conv_bs, w_cls_conv, b_cls_conv,
            w_cls_pooler, b_cls_pooler, w_switch, w_cls_layer, b_cls_layer)


def pack_params(params):
    """ONE-TIME repack into two kernel slabs (hoisted out of the forward path)."""
    (emb_table, conv_ws, conv_bs, w_cc, b_cc, w_cp, b_cp, w_sw, w_cl, b_cl) = params

    # ---- bf16 slab: [ padded emb table | packed conv weight | fused head weight ] ---------
    emb_pad = jnp.zeros((V_PAD, HIDDEN), jnp.float32).at[:VOCAB_SIZE].set(emb_table)

    w_conv = jnp.zeros((FS_MAX, HIDDEN, F_PAD), jnp.float32)      # tap-major im2col weight
    bias_conv = jnp.zeros((F_PAD,), jnp.float32)
    t = jnp.arange(LOUT_PAD)[:, None]
    valid = jnp.zeros((LOUT_PAD, F_PAD), jnp.bool_)               # (window, channel) validity
    for g, (fs, w, b) in enumerate(zip(FILTER_SIZES, conv_ws, conv_bs)):
        lo, hi = g * FILTER_NUM, (g + 1) * FILTER_NUM
        w_conv = w_conv.at[:fs, :, lo:hi].set(jnp.transpose(w[:, 0], (1, 2, 0)))  # (fs,H,F)
        bias_conv = bias_conv.at[lo:hi].set(b)
        valid = valid.at[:, lo:hi].set(
            jnp.broadcast_to(t <= SEQ_LEN - fs, (LOUT_PAD, FILTER_NUM)))
    w_conv2d = w_conv.reshape(FS_MAX * HIDDEN, F_PAD)             # rows: k*H + h

    # fused head: logits = [pooled|pooler|x_emb] @ W_fused + b_fused  (switch/cls folded in)
    sw0, sw1, sw2 = w_sw[0, 0], w_sw[0, 1], w_sw[0, 2]            # stack order: conv, emb, pooler
    wcl_t = jnp.transpose(w_cl)                                   # (R, C)
    w_fused = jnp.zeros((HEAD_K, SLAB_W), jnp.float32)
    w_fused = w_fused.at[0:TOTAL_F, :CLASS_NUM].set(sw0 * (jnp.transpose(w_cc) @ wcl_t))
    w_fused = w_fused.at[F_PAD:F_PAD + HIDDEN, :CLASS_NUM].set(sw2 * (jnp.transpose(w_cp) @ wcl_t))
    w_fused = w_fused.at[F_PAD + HIDDEN:HEAD_K, :CLASS_NUM].set(sw1 * wcl_t)
    b_fused = (sw0 * b_cc + sw2 * b_cp) @ wcl_t + b_cl            # (C,)

    bf16_slab = jnp.concatenate([emb_pad, w_conv2d, w_fused], axis=0).astype(jnp.bfloat16)
    assert bf16_slab.shape == (BF16_ROWS, SLAB_W)

    # ---- f32 slab: [ batch-tiled masked conv bias | fused head bias | zero padding ] -------
    masked_bias = jnp.where(valid, bias_conv[None, :], jnp.float32(-1e30))   # (LOUT_PAD, F_PAD)
    masked_bias = jnp.tile(masked_bias, (BATCH, 1))                          # (B*LOUT_PAD, F_PAD)
    b_row = jnp.zeros((1, SLAB_W), jnp.float32).at[0, :CLASS_NUM].set(b_fused)
    pad = jnp.zeros((F32_ROWS - BIAS_ROWS - 1, SLAB_W), jnp.float32)
    f32_slab = jnp.concatenate([masked_bias, b_row, pad], axis=0)
    assert f32_slab.shape == (F32_ROWS, SLAB_W)

    return bf16_slab, f32_slab


# ------------------------------------ pure-JAX reference ---------------------------------
def reference_forward(tokens, pooler_output, x_emb, params):
    """f32 re-implementation of the PyTorch forward (post-BERT part) for validation."""
    (emb_table, conv_ws, conv_bs, w_cc, b_cc, w_cp, b_cp, w_sw, w_cl, b_cl) = params
    x = emb_table[tokens]                                           # (B, SEQ, H)
    pooled = []
    for fs, w, b in zip(FILTER_SIZES, conv_ws, conv_bs):
        windows = [jnp.einsum('bkh,fkh->bf', x[:, t:t + fs, :], w[:, 0]) + b
                   for t in range(SEQ_LEN - fs + 1)]
        conv = jnp.stack(windows, axis=2)                           # (B, F, T)
        pooled.append(jnp.max(jax.nn.relu(conv), axis=2))           # (B, F)
    pooled = jnp.concatenate(pooled, axis=1)                        # (B, 3F)
    x_conv_out = pooled @ w_cc.T + b_cc
    pooler_out = pooler_output @ w_cp.T + b_cp
    emb_out = x_emb
    cls = w_sw[0, 0] * x_conv_out + w_sw[0, 1] * emb_out + w_sw[0, 2] * pooler_out
    logits = cls @ w_cl.T + b_cl
    return jax.nn.softmax(logits, axis=1)


if __name__ == "__main__":
    key = jax.random.PRNGKey(0)
    k_tok, k_pool, k_emb, k_param = jax.random.split(key, 4)

    # stand-in runtime inputs: token ids (tokenizer output), BERT pooler_output, x_emb
    tokens = jax.random.randint(k_tok, (BATCH, SEQ_LEN), 0, VOCAB_SIZE, jnp.int32)
    pooler_output = jax.random.normal(k_pool, (BATCH, HIDDEN), jnp.float32)
    x_emb = jax.random.normal(k_emb, (BATCH, REL_EMB_DIM), jnp.float32)

    params = init_params(k_param)
    bf16_slab, f32_slab = pack_params(params)     # one-time prep; NOT part of the forward

    probs = bert_cnn_emb_forward(tokens, pooler_output, x_emb, bf16_slab, f32_slab)
    probs = jax.block_until_ready(probs)

    ref = reference_forward(tokens, pooler_output, x_emb, params)
    assert probs.shape == (BATCH, CLASS_NUM)
    assert bool(jnp.all(jnp.abs(jnp.sum(probs, axis=1) - 1.0) < 1e-3))      # softmax sanity
    assert bool(jnp.max(jnp.abs(probs - ref)) < 6e-2)                       # bf16 weights/acts
    print("KERNEL_OK")
</pallas_src>

<mosaic_0001>
module attributes {stable_mosaic.version = 11 : i64} {
  func.func @bert_cnn_emb_kernel(%arg0: memref<2x16xi32, #tpu.memory_space<vmem>>, %arg1: memref<2x32xf32, #tpu.memory_space<vmem>>, %arg2: memref<2x32xf32, #tpu.memory_space<vmem>>, %arg3: memref<352x32xbf16, #tpu.memory_space<vmem>>, %arg4: memref<40x32xf32, #tpu.memory_space<vmem>>, %arg5: memref<2x4xf32, #tpu.memory_space<vmem>>) attributes {dimension_semantics = [], scalar_prefetch = 0 : i64, scratch_operands = 0 : i64, tpu.core_type = #tpu.core_type<tc>} {
    %c0 = arith.constant 0 : index
    %c0_0 = arith.constant 0 : index
    %0 = vector.load %arg0[%c0, %c0_0] : memref<2x16xi32, #tpu.memory_space<vmem>>, vector<2x16xi32>
    %1 = tpu.iota {dimensions = array<i32: 2>} : vector<2x16x128xi32>
    %2 = vector.shape_cast %0 : vector<2x16xi32> to vector<2x16x1xi32>
    %3 = vector.broadcast %2 : vector<2x16x1xi32> to vector<2x16x128xi32>
    %4 = arith.cmpi eq, %1, %3 : vector<2x16x128xi32>
    %cst = arith.constant 1.000000e+00 : f32
    %cst_1 = arith.constant 0.000000e+00 : f32
    %5 = vector.broadcast %cst : f32 to vector<2x16x128xf32>
    %6 = vector.broadcast %cst_1 : f32 to vector<2x16x128xf32>
    %7 = arith.select %4, %5, %6 : vector<2x16x128xi1>, vector<2x16x128xf32>
    %8 = vector.shape_cast %7 : vector<2x16x128xf32> to vector<32x128xf32>
    %9 = arith.truncf %8 : vector<32x128xf32> to vector<32x128xbf16>
    %c0_2 = arith.constant 0 : index
    %c0_3 = arith.constant 0 : index
    %10 = vector.load %arg3[%c0_2, %c0_3] : memref<352x32xbf16, #tpu.memory_space<vmem>>, vector<128x32xbf16>
    %cst_4 = arith.constant dense<0.000000e+00> : vector<32x32xf32>
    %11 = tpu.matmul %9, %10, %cst_4 {dimension_numbers = #tpu.dot_dimension_numbers<[1], [0], [0], [1], [0, 0, 1, 1], [], []>} : vector<32x128xbf16>, vector<128x32xbf16>, vector<32x32xf32> -> vector<32x32xf32>
    %12 = vector.shape_cast %11 : vector<32x32xf32> to vector<2x16x32xf32>
    %cst_5 = arith.constant 0.000000e+00 : f32
    %13 = vector.broadcast %cst_5 : f32 to vector<2x8x32xf32>
    %14 = tpu.concatenate %12, %13 in 1 : vector<2x16x32xf32>, vector<2x8x32xf32> -> vector<2x24x32xf32>
    %15 = vector.extract_strided_slice %14 {offsets = [0, 0, 0], sizes = [2, 16, 32], strides = [1, 1, 1]} : vector<2x24x32xf32> to vector<2x16x32xf32>
    %16 = vector.extract_strided_slice %14 {offsets = [0, 1, 0], sizes = [2, 16, 32], strides = [1, 1, 1]} : vector<2x24x32xf32> to vector<2x16x32xf32>
    %17 = vector.extract_strided_slice %14 {offsets = [0, 2, 0], sizes = [2, 16, 32], strides = [1, 1, 1]} : vector<2x24x32xf32> to vector<2x16x32xf32>
    %18 = vector.extract_strided_slice %14 {offsets = [0, 3, 0], sizes = [2, 16, 32], strides = [1, 1, 1]} : vector<2x24x32xf32> to vector<2x16x32xf32>
    %19 = tpu.concatenate %15, %16, %17, %18 in 2 : vector<2x16x32xf32>, vector<2x16x32xf32>, vector<2x16x32xf32>, vector<2x16x32xf32> -> vector<2x16x128xf32>
    %20 = vector.shape_cast %19 : vector<2x16x128xf32> to vector<32x128xf32>
    %21 = arith.truncf %20 : vector<32x128xf32> to vector<32x128xbf16>
    %c128 = arith.constant 128 : index
    %c0_6 = arith.constant 0 : index
    %22 = vector.load %arg3[%c128, %c0_6] : memref<352x32xbf16, #tpu.memory_space<vmem>>, vector<128x32xbf16>
    %cst_7 = arith.constant dense<0.000000e+00> : vector<32x32xf32>
    %23 = tpu.matmul %21, %22, %cst_7 {dimension_numbers = #tpu.dot_dimension_numbers<[1], [0], [0], [1], [0, 0, 1, 1], [], []>} : vector<32x128xbf16>, vector<128x32xbf16>, vector<32x32xf32> -> vector<32x32xf32>
    %c0_8 = arith.constant 0 : index
    %c0_9 = arith.constant 0 : index
    %24 = vector.load %arg4[%c0_8, %c0_9] : memref<40x32xf32, #tpu.memory_space<vmem>>, vector<32x32xf32>
    %25 = arith.addf %23, %24 : vector<32x32xf32>
    %cst_10 = arith.constant 0.000000e+00 : f32
    %26 = vector.broadcast %cst_10 : f32 to vector<32x32xf32>
    %27 = arith.maximumf %25, %26 : vector<32x32xf32>
    %28 = vector.shape_cast %27 : vector<32x32xf32> to vector<2x16x32xf32>
    %cst_11 = arith.constant dense<0xFF800000> : vector<2x32xf32>
    %29 = vector.multi_reduction <maximumf>, %28, %cst_11 [1] : vector<2x16x32xf32> to vector<2x32xf32>
    %c0_12 = arith.constant 0 : index
    %c0_13 = arith.constant 0 : index
    %30 = vector.load %arg1[%c0_12, %c0_13] : memref<2x32xf32, #tpu.memory_space<vmem>>, vector<2x32xf32>
    %c0_14 = arith.constant 0 : index
    %c0_15 = arith.constant 0 : index
    %31 = vector.load %arg2[%c0_14, %c0_15] : memref<2x32xf32, #tpu.memory_space<vmem>>, vector<2x32xf32>
    %32 = tpu.concatenate %29, %30, %31 in 1 : vector<2x32xf32>, vector<2x32xf32>, vector<2x32xf32> -> vector<2x96xf32>
    %33 = arith.truncf %32 : vector<2x96xf32> to vector<2x96xbf16>
    %c256 = arith.constant 256 : index
    %c0_16 = arith.constant 0 : index
    %34 = vector.load %arg3[%c256, %c0_16] : memref<352x32xbf16, #tpu.memory_space<vmem>>, vector<96x32xbf16>
    %cst_17 = arith.constant dense<0.000000e+00> : vector<2x32xf32>
    %35 = tpu.matmul %33, %34, %cst_17 {dimension_numbers = #tpu.dot_dimension_numbers<[1], [0], [0], [1], [0, 0, 1, 1], [], []>} : vector<2x96xbf16>, vector<96x32xbf16>, vector<2x32xf32> -> vector<2x32xf32>
    %c32 = arith.constant 32 : index
    %c0_18 = arith.constant 0 : index
    %36 = vector.load %arg4[%c32, %c0_18] : memref<40x32xf32, #tpu.memory_space<vmem>>, vector<1x32xf32>
    %37 = vector.broadcast %36 : vector<1x32xf32> to vector<2x32xf32>
    %38 = arith.addf %35, %37 : vector<2x32xf32>
    %39 = vector.extract_strided_slice %38 {offsets = [0, 0], sizes = [2, 4], strides = [1, 1]} : vector<2x32xf32> to vector<2x4xf32>
    %cst_19 = arith.constant dense<0xFF800000> : vector<2xf32>
    %40 = vector.multi_reduction <maximumf>, %39, %cst_19 [1] : vector<2x4xf32> to vector<2xf32>
    %41 = vector.shape_cast %40 : vector<2xf32> to vector<2x1xf32>
    %42 = vector.broadcast %41 : vector<2x1xf32> to vector<2x4xf32>
    %43 = arith.subf %39, %42 : vector<2x4xf32>
    %44 = math.exp %43 : vector<2x4xf32>
    %cst_20 = arith.constant dense<0.000000e+00> : vector<2xf32>
    %45 = vector.multi_reduction <add>, %44, %cst_20 [1] : vector<2x4xf32> to vector<2xf32>
    %46 = vector.shape_cast %45 : vector<2xf32> to vector<2x1xf32>
    %47 = vector.broadcast %46 : vector<2x1xf32> to vector<2x4xf32>
    %48 = arith.divf %44, %47 : vector<2x4xf32>
    %c0_21 = arith.constant 0 : index
    %c0_22 = arith.constant 0 : index
    %49 = vector.load %arg5[%c0_21, %c0_22] : memref<2x4xf32, #tpu.memory_space<vmem>>, vector<2x4xf32>
    tpu.vector_store %arg5[%c0_21, %c0_22], %48 {strides = array<i32>} : memref<2x4xf32, #tpu.memory_space<vmem>>, vector<2x4xf32>,
    return
  }
}

</mosaic_0001>

<bundles_post_ra>
// kernel: tpu_custom_call.1
= control target key start
LH: loop header
LB: loop body
LE: loop exit
PB: predicated region body
PF: predicated region fallthrough
CT: control target
= control target key end

     0   :  { %v23_v0 = vlaneseq  ;;  %s928_s0 = inlined_call_operand.vmem [shape: s32[2,16], index: 0, kind: input, shape index: {}]   ;;  %s929_s1 = inlined_call_operand.vmem [shape: f32[2,32], index: 1, kind: input, shape index: {}]   ;;  %s930_s2 = inlined_call_operand.vmem [shape: f32[2,32], index: 2, kind: input, shape index: {}]   ;;  %s931_s3 = inlined_call_operand.vmem [shape: bf16[352,32], index: 3, kind: input, shape index: {}]   ;;  %s932_s4 = inlined_call_operand.vmem [shape: f32[40,32], index: 4, kind: input, shape index: {}]   ;;  %s933_s5 = inlined_call_operand.hbm [shape: f32[2,4], index: 5, kind: output, shape index: {}]  }
   0x1   :  { %v686_v1 = vld [vmem:[%s931_s3 + $0x38] sm:$0xff]   ;;  %v687_v3 = vld [vmem:[%s931_s3 + $0x30] sm:$0xff]   ;;  %v22_v4 = vld [vmem:[%s928_s0] sm:$0x3] }
   0x2   :  { %v26_v2 = vshrl.u32 %v23_v0, 7  ;;  %593 = vmatprep.subr.bf16.mxu0 %v686_v1  ;;  %v688_v9 = vld [vmem:[%s931_s3 + $0x28] sm:$0xff]   ;;  %v689_v10 = vld [vmem:[%s931_s3 + $0x20] sm:$0xff]   ;;  %v690_v11 = vld [vmem:[%s931_s3 + $0x18] sm:$0xff]  }
   0x3   :  { %594 = vmatpush3.bf16.msra.mxu0 %v686_v1  ;;  %v691_v12 = vld [vmem:[%s931_s3 + $0x10] sm:$0xff]  }
   0x4   :  { %v38_v5 = vsub.s32 1, %v26_v2  ;;  %v27_v6 = vsub.s32 0, %v26_v2  ;;  %595 = vmatprep.subr.bf16.mxu0 %v687_v3 }
   0x6   :  { %v39_v7 = vrot.slane %v22_v4, %v38_v5  ;;  %v28_v8 = vrot.slane %v22_v4, %v27_v6 }
   0x7   :  { %596 = vmatpush3.bf16.msra.mxu0 %v687_v3 }
   0x8   :  { %41 = vbcast.lane.b32.xlu1 %v39_v7, 256  ;;  %30 = vbcast.lane.b32.xlu0 %v28_v8, 256 }
   0x9   :  { %597 = vmatprep.subr.bf16.mxu0 %v688_v9 }
   0xb   :  { %598 = vmatpush3.bf16.msra.mxu0 %v688_v9 }
   0xc   :  { %45 = vbcast.lane.b32.xlu1 %v39_v7, 264  ;;  %34 = vbcast.lane.b32.xlu0 %v28_v8, 264 }
   0xd   :  { %599 = vmatprep.subr.bf16.mxu0 %v689_v10 }
   0xf   :  { %600 = vmatpush3.bf16.msra.mxu0 %v689_v10 }
  0x10   :  { %601 = vmatprep.subr.bf16.mxu0 %v690_v11 }
  0x11   :  { %10 = vsyncpa [#allocation3], 0  ;;  %v692_v13 = vld [vmem:[%s931_s3 + $0x8] sm:$0xff]   ;;  %v693_v14 = vld [vmem:[%s931_s3] sm:$0xff]   ;;  %v24_v17 = vand.u32 127, %v23_v0  ;;  %v735_v21 = vmov 0.0  }
  0x12   :  { %v734_v20 = vmov 1.0|1.0   ;;  %v694_v22 = vld [vmem:[%s931_s3 + $0x78] sm:$0xff]   ;;  %v695_v23 = vld [vmem:[%s931_s3 + $0x70] sm:$0xff]   ;;  %v696_v24 = vld [vmem:[%s931_s3 + $0x68] sm:$0xff]   ;;  %vm175_vm6 = vcmask 1046528  }
  0x13   :  { %602 = vmatpush3.bf16.msra.mxu0 %v690_v11  ;;  %613 = vmatprep.subr.bf16.mxu1 %v694_v22  ;;  %v697_v25 = vld [vmem:[%s931_s3 + $0x60] sm:$0xff]   ;;  %v698_v26 = vld [vmem:[%s931_s3 + $0x58] sm:$0xff]   ;;  %v699_v29 = vld [vmem:[%s931_s3 + $0x50] sm:$0xff]   ;;  %v179_v31 = vrot.slane %v735_v21, 1  ;;  %vm197_vm7 = vcmask 1045504   ;;  %v201_v36 = vrot.slane %v735_v21, 2 }
  0x14   :  { %603 = vmatprep.subr.bf16.mxu0 %v691_v12  ;;  %614 = vmatpush3.bf16.msra.mxu1 %v694_v22  ;;  %v700_v37 = vld [vmem:[%s931_s3 + $0x48] sm:$0xff]   ;;  %v701_v42 = vld [vmem:[%s931_s3 + $0x40] sm:$0xff]   ;;  %v223_v45 = vrot.slane %v735_v21, 3  ;;  %s736_s26 = smov 32   ;;  %vm219_vm8 = vcmask 1044480   ;;  %s737_s27 = smov 64  }
  0x15   :  { %615 = vmatprep.subr.bf16.mxu1 %v695_v23  ;;  %s738_s0 = smov 96   ;;  %v398_v3 = vld [vmem:[%s930_s2] sm:$0x3]  ;;  %vm241_vm9 = vcmask 261120   ;;  %vm246_vm10 = vcmask 523264   ;;  %vm251_vm11 = vcmask 785408  }
  0x16   :  { %v397_v4 = vld [vmem:[%s929_s1] sm:$0x3]  ;;  %vm739_vm12 = vmmov 0   ;;  %vm401_vm13 = vcmask 1041409   ;;  %vm511_vm14 = vcmask 25600  }
  0x17   :  { %604 = vmatpush3.bf16.msra.mxu0 %v691_v12 }
  0x18   :  { %605 = vmatprep.subr.bf16.mxu0 %v692_v13  ;;  %616 = vmatpush3.bf16.msra.mxu1 %v695_v23 }
  0x19   :  { %617 = vmatprep.subr.bf16.mxu1 %v696_v24 }
  0x1b   :  { %606 = vmatpush3.bf16.msra.mxu0 %v692_v13 }
  0x1c   :  { %607 = vmatprep.subr.bf16.mxu0 %v693_v14  ;;  %618 = vmatpush3.bf16.msra.mxu1 %v696_v24 }
  0x1d   :  { %619 = vmatprep.subr.bf16.mxu1 %v697_v25 }
  0x1f   :  { %608 = vmatpush3.bf16.msra.mxu0 %v693_v14 }
  0x20   :  { %633 = vmatprep.subr.bf16.mxu0 %v735_v21  ;;  %620 = vmatpush3.bf16.msra.mxu1 %v697_v25 }
  0x21   :  { %621 = vmatprep.subr.bf16.mxu1 %v698_v26 }
  0x24   :  { %622 = vmatpush3.bf16.msra.mxu1 %v698_v26 }
  0x25   :  { %623 = vmatprep.subr.bf16.mxu1 %v699_v29 }
  0x28   :  { %624 = vmatpush3.bf16.msra.mxu1 %v699_v29 }
  0x29   :  { %625 = vmatprep.subr.bf16.mxu1 %v700_v37 }
  0x2c   :  { %626 = vmatpush3.bf16.msra.mxu1 %v700_v37 }
  0x2d   :  { %627 = vmatprep.subr.bf16.mxu1 %v701_v42 }
  0x30   :  { %628 = vmatpush3.bf16.msra.mxu1 %v701_v42  ;;  %v706_v42 = vld [vmem:[%s931_s3 + $0x88] sm:$0xff]  }
  0x7a   :  { %v42_v15 = vpop.permute.xlu1 %41  ;;  %v31_v16 = vpop.permute.xlu0 %30 }
  0x7b   :  { %vm49_vm0 = vcmp.eq.s32.totalorder %v24_v17, %v42_v15  ;;  %vm47_vm3 = vcmp.eq.s32.totalorder %v24_v17, %v31_v16 }
  0x7e   :  { %v46_v18 = vpop.permute.xlu1 %45  ;;  %v35_v19 = vpop.permute.xlu0 %34 }
  0x7f   :  { %vm50_vm1 = vcmp.eq.s32.totalorder %v24_v17, %v46_v18  ;;  %vm48_vm2 = vcmp.eq.s32.totalorder %v24_v17, %v35_v19 }
  0x80   :  { %vm548_vm4 = vmpackc.low %vm50_vm1, %vm49_vm0 }
  0x81   :  { %vm546_vm5 = vmpackc.low %vm48_vm2, %vm47_vm3 }
  0x82   :  { %609 = vmatprep.mubr.msk.bf16.mxu0 %vm546_vm5, %v734_v20 }
  0x83   :  { %610 = vmatmul.mubr.msk.bf16.vlgmr.msra.gmra.mxu0 %vm548_vm4, %v734_v20 }
  0x84   :  { %645 = vmatprep.mubr.msk.bf16.mxu0 %vm739_vm12, %v735_v21 }
 0x143   :  { %v814_v27 = vpop.f32.mrf.mxu0 }
 0x144   :  { %v181_v32 = vrot.slane %v814_v27, 1  ;;  %v203_v43 = vrot.slane %v814_v27, 2  ;;  %v225_v57 = vrot.slane %v814_v27, 3 }
 0x145   :  { %v816_v28 = vpop.f32.mrf.mxu0 }
 0x146   :  { %v176_v38 = vrot.slane %v816_v28, 1  ;;  %v198_v46 = vrot.slane %v816_v28, 2  ;;  %v220_v58 = vrot.slane %v816_v28, 3 }
 0x147   :  { %v821_v30 = vpop.f32.mrf.mxu0 }
 0x148   :  { %v182_v33 = vrot.slane %v821_v30, 1  ;;  %v204_v34 = vrot.slane %v821_v30, 2  ;;  %v226_v50 = vrot.slane %v821_v30, 3 }
 0x149   :  { %v827_v35 = vpop.f32.mrf.mxu0 }
 0x14a   :  { %v177_v39 = vrot.slane %v827_v35, 1  ;;  %v199_v40 = vrot.slane %v827_v35, 2  ;;  %v183_v41 = vsel %vm175_vm6, %v181_v32, %v182_v33  ;;  %v184_v44 = vsel %vm175_vm6, %v182_v33, %v179_v31 }
 0x14b   :  { %v656_v47 = vpack.i.bf16 %v184_v44, %v183_v41  ;;  %v205_v52 = vsel %vm197_vm7, %v203_v43, %v204_v34  ;;  %v206_v53 = vsel %vm197_vm7, %v204_v34, %v201_v36  ;;  %v221_v54 = vrot.slane %v827_v35, 3  ;;  %v705_v41 = vld [vmem:[%s931_s3 + $0x90] sm:$0xff]   ;;  %v707_v43 = vld [vmem:[%s931_s3 + $0x80] sm:$0xff]  }
 0x14c   :  { %v178_v48 = vsel %vm175_vm6, %v176_v38, %v177_v39  ;;  %v180_v49 = vsel %vm175_vm6, %v177_v39, %v179_v31  ;;  %v200_v55 = vsel %vm197_vm7, %v198_v46, %v199_v40  ;;  %v202_v56 = vsel %vm197_vm7, %v199_v40, %v201_v36  ;;  %v702_v38 = vld [vmem:[%s931_s3 + $0xa8] sm:$0xff]   ;;  %v703_v39 = vld [vmem:[%s931_s3 + $0xa0] sm:$0xff]   ;;  %v704_v40 = vld [vmem:[%s931_s3 + $0x98] sm:$0xff]  }
 0x14d   :  { %v666_v51 = vpack.i.bf16 %v180_v49, %v178_v48  ;;  %657 = vrot.lane.b32.xlu1 %v656_v47, %s736_s26  ;;  %v661_v59 = vpack.i.bf16 %v206_v53, %v205_v52  ;;  %v671_v60 = vpack.i.bf16 %v202_v56, %v200_v55  ;;  %v227_v61 = vsel %vm219_vm8, %v225_v57, %v226_v50  ;;  %v276_v44 = vld [vmem:[%s932_s4 + $0x10] sm:$0xff]  ;;  %v274_v46 = vld [vmem:[%s932_s4] sm:$0xff]  ;;  %v277_v49 = vld [vmem:[%s932_s4 + $0x18] sm:$0xff] }
 0x14e   :  { %v228_v62 = vsel %vm219_vm8, %v226_v50, %v223_v45  ;;  %v222_v63 = vsel %vm219_vm8, %v220_v58, %v221_v54  ;;  %v224_v0 = vsel %vm219_vm8, %v221_v54, %v223_v45  ;;  %634 = vmatpush3.bf16.msra.mxu0 %v702_v38 }
 0x14f   :  { %667 = vrot.lane.b32.xlu0 %v666_v51, %s736_s26  ;;  %v681_v1 = vpack.i.bf16 %v228_v62, %v227_v61  ;;  %v676_v2 = vpack.i.bf16 %v224_v0, %v222_v63  ;;  %635 = vmatprep.subr.bf16.mxu0 %v735_v21 }
 0x151   :  { %662 = vrot.lane.b32.xlu1 %v661_v59, %s737_s27 }
 0x152   :  { %636 = vmatpush3.bf16.msra.mxu0 %v703_v39 }
 0x153   :  { %672 = vrot.lane.b32.xlu0 %v671_v60, %s737_s27  ;;  %637 = vmatprep.subr.bf16.mxu0 %v735_v21 }
 0x155   :  { %682 = vrot.lane.b32.xlu1 %v681_v1, %s738_s0 }
 0x156   :  { %638 = vmatpush3.bf16.msra.mxu0 %v704_v40 }
 0x157   :  { %677 = vrot.lane.b32.xlu0 %v676_v2, %s738_s0  ;;  %639 = vmatprep.subr.bf16.mxu0 %v735_v21 }
 0x159   :  { %409 = vrot.lane.b32.xlu1 %v398_v3, %s737_s27 }
 0x15a   :  { %640 = vmatpush3.bf16.msra.mxu0 %v705_v41 }
 0x15b   :  { %405 = vrot.lane.b32.xlu0 %v397_v4, %s736_s26  ;;  %641 = vmatprep.subr.bf16.mxu0 %v735_v21 }
 0x15e   :  { %642 = vmatpush3.bf16.msra.mxu0 %v706_v42 }
 0x15f   :  { %643 = vmatprep.subr.bf16.mxu0 %v735_v21  ;;  %v275_v21 = vld [vmem:[%s932_s4 + $0x8] sm:$0xff] }
 0x162   :  { %644 = vmatpush3.bf16.msra.mxu0 %v707_v43 }
 0x1bf   :  { %v658_v5 = vpop.permute.xlu1 %657 }
 0x1c0   :  { %v660_v7 = vunpack.i.h.bf16 %v658_v5  ;;  %v659_v8 = vunpack.i.l.bf16 %v658_v5 }
 0x1c1   :  { %v668_v6 = vpop.permute.xlu0 %667 }
 0x1c2   :  { %v670_v10 = vunpack.i.h.bf16 %v668_v6  ;;  %v669_v11 = vunpack.i.l.bf16 %v668_v6  ;;  %v245_v17 = vsel %vm241_vm9, %v821_v30, %v660_v7  ;;  %v244_v18 = vsel %vm241_vm9, %v814_v27, %v659_v8 }
 0x1c3   :  { %v663_v9 = vpop.permute.xlu1 %662 }
 0x1c4   :  { %v665_v13 = vunpack.i.h.bf16 %v663_v9  ;;  %v664_v14 = vunpack.i.l.bf16 %v663_v9  ;;  %v242_v24 = vsel %vm241_vm9, %v816_v28, %v669_v11  ;;  %v243_v25 = vsel %vm241_vm9, %v827_v35, %v670_v10 }
 0x1c5   :  { %v673_v12 = vpop.permute.xlu0 %672 }
 0x1c6   :  { %v675_v15 = vunpack.i.h.bf16 %v673_v12  ;;  %v674_v16 = vunpack.i.l.bf16 %v673_v12  ;;  %v249_v26 = vsel %vm246_vm10, %v244_v18, %v664_v14  ;;  %v250_v29 = vsel %vm246_vm10, %v245_v17, %v665_v13 }
 0x1c7   :  { %v683_v19 = vpop.permute.xlu1 %682 }
 0x1c8   :  { %v685_v20 = vunpack.i.h.bf16 %v683_v19  ;;  %v684_v22 = vunpack.i.l.bf16 %v683_v19  ;;  %v247_v32 = vsel %vm246_vm10, %v242_v24, %v674_v16  ;;  %v248_v27 = vsel %vm246_vm10, %v243_v25, %v675_v15  ;;  %v558_v19 = vld [vmem:[%s932_s4 + $0x20] ss:$0 sm:$0xff]  ;;  %s740_s4 = smov [#allocation2]  }
 0x1c9   :  { %v678_v23 = vpop.permute.xlu0 %677  ;;  %s530_s26 = sshll.u32 %s740_s4, 4  ;;  %s531_s26 = int_to_ptr.vmem [resolvable:$true] %s530_s26 }
 0x1ca   :  { %v680_v31 = vunpack.i.h.bf16 %v678_v23  ;;  %v679_v30 = vunpack.i.l.bf16 %v678_v23  ;;  %v254_v33 = vsel %vm251_vm11, %v249_v26, %v684_v22  ;;  %v255_v34 = vsel %vm251_vm11, %v250_v29, %v685_v20  ;;  %s712_s27 = scalar_lea.vmem %s531_s26, 32  ;;  %p717_p1 = scmp.lt.s32.totalorder %s531_s26, %s531_s26 }
 0x1cb   :  { %v257_v35 = vpack.c.bf16 %v255_v34, %v254_v33  ;;  %v410_v14 = vpop.permute.xlu1 %409  ;;  %p713_p0 = scmp.ne.s32.totalorder %s531_s26, %s712_s27  ;;  %p718_p2 = scmp.lt.s32.totalorder %s712_s27, %s712_s27 }
 0x1cc   :  { %v252_v36 = vsel %vm251_vm11, %v247_v32, %v679_v30  ;;  %v253_v28 = vsel %vm251_vm11, %v248_v27, %v680_v31 }
 0x1cd   :  { %v256_v37 = vpack.c.bf16 %v253_v28, %v252_v36  ;;  %v406_v11 = vpop.permute.xlu0 %405  ;;  %p719_p3 = por %p718_p2, %p717_p1 }
 0x1cf   :  { %629 = vmatprep.mubr.bf16.mxu1 %v256_v37  ;;  %p720_p4 = pnand %p719_p3, %p713_p0 }
 0x1d0   :  { %630 = vmatmul.mubr.bf16.vlgmr.msra.gmra.mxu1 %v257_v35 }
 0x290   :  { %v631_v45 = vpop.f32.mrf.mxu1 }
 0x291   :  { %v369_v47 = vadd.f32 %v631_v45, %v276_v44 }
 0x292   :  { %v360_v48 = vpop.f32.mrf.mxu1 }
 0x293   :  { %v361_v50 = vadd.f32 %v360_v48, %v274_v46  ;;  %v377_v52 = vmax.f32 %v369_v47, 0.0 }
 0x294   :  { %v632_v51 = vpop.f32.mrf.mxu1 }
 0x295   :  { %v372_v53 = vadd.f32 %v632_v51, %v277_v49  ;;  %v375_v55 = vmax.f32 %v361_v50, 0.0  ;;  %v388_v58 = vsel %vm241_vm9, %v377_v52, -inf }
 0x296   :  { %v363_v54 = vpop.f32.mrf.mxu1 }
 0x297   :  { %v378_v56 = vmax.f32 %v372_v53, 0.0  ;;  %v364_v57 = vadd.f32 %v363_v54, %v275_v21  ;;  %v379_v62 = vsel %vm241_vm9, %v375_v55, -inf }
 0x299   :  { %v389_v59 = vsel %vm241_vm9, %v378_v56, -inf  ;;  %v376_v60 = vmax.f32 %v364_v57, 0.0 }
 0x29a   :  { %v390_v61 = vmax.f32 %v388_v58, %v389_v59 }
 0x29b   :  { %v380_v63 = vsel %vm241_vm9, %v376_v60, -inf }
 0x29c   :  { %v391_v0 = vrot.slane %v390_v61, 4  ;;  %v381_v1 = vmax.f32 %v379_v62, %v380_v63 }
 0x29e   :  { %v392_v2 = vmax.f32 %v390_v61, %v391_v0  ;;  %v382_v3 = vrot.slane %v381_v1, 4 }
 0x2a0   :  { %v393_v4 = vrot.slane %v392_v2, 2  ;;  %v383_v5 = vmax.f32 %v381_v1, %v382_v3 }
 0x2a2   :  { %v394_v6 = vmax.f32 %v392_v2, %v393_v4  ;;  %v384_v7 = vrot.slane %v383_v5, 2 }
 0x2a4   :  { %v395_v8 = vrot.slane %v394_v6, 1  ;;  %v385_v9 = vmax.f32 %v383_v5, %v384_v7 }
 0x2a6   :  { %v386_v10 = vrot.slane %v385_v9, 1  ;;  %v396_v13 = vmax.f32 %v394_v6, %v395_v8 }
 0x2a8   :  { %v387_v12 = vmax.f32 %v385_v9, %v386_v10 }
 0x2aa   :  { %v402_v15 = vsel %vm401_vm13, %v396_v13, %v387_v12 }
 0x2ab   :  { %v412_v16 = vsel %vm241_vm9, %v402_v15, %v406_v11 }
 0x2ac   :  { %v413_v17 = vsel %vm246_vm10, %v412_v16, %v410_v14 }
 0x2ad   :  { %v414_v18 = vpack.c.bf16 %v413_v17, %v413_v17 }
 0x2af   :  { %646 = vmatmul.mubr.msk.bf16.vlgmr.msra.gmra.mxu0 %vm251_vm11, %v414_v18 }
 0x36f   :  { %v505_v20 = vpop.f32.mrf.mxu0 }
 0x370   :  { %v506_v22 = vadd.f32 %v558_v19, %v505_v20 }
 0x371   :  { %v647_v23 = vpop.f32.mrf.mxu0 }
 0x372   :  { %v512_v24 = vsel %vm511_vm14, %v506_v22, -inf }
 0x373   :  { %513 = vmax.xlane.f32.xlu0 %v512_v24  ;;  %v508_v25 = vpop.f32.mrf.mxu0 }
 0x375   :  { %v648_v26 = vpop.f32.mrf.mxu0 }
 0x3fc   :  { %v514_v29 = vpop.xlane.xlu0 %513 }
 0x3fd   :  { %v515_v31 = vsub.f32 %v506_v22, %v514_v29 }
 0x3ff   :  { %v516_v30 = vmul.f32 1.442695, %v515_v31 }
 0x401   :  { %708 = vpow2.f32 %v516_v30 }
 0x40e   :  { %v709_v32 = vpop.eup %708 }
 0x40f   :  { %v518_v27 = vsel %vm511_vm14, %v709_v32, 0.0 }
 0x410   :  { %519 = vadd.xlane.f32.xlu1 %v518_v27 }
 0x499   :  { %v520_v33 = vpop.xlane.xlu1 %519 }
 0x49a   :  { %710 = vrcp.f32 %v520_v33 }
 0x4a7   :  { %v711_v34 = vpop.eup %710 }
 0x4a8   :  { %v522_v36 = vmul.f32 %v711_v34, %v709_v32 }
 0x4aa   :  { %523 = vst.msk [vmem:[#allocation2] sm:$0x3] %vm511_vm14, %v522_v36 }
 0x4ab   :  { %723 = shalt.err (!%p720_p4)
}
 0x4ac   :  { %533 = dma.vmem_to_hbm [thread:$0]  %s531_s26, 32, %s933_s5, [#allocation3]  }
 0x4ad   :  { %732 = dma.done.wait [#allocation3], 32  }
 0x4ae   :  { %733 = vsyncadd [#allocation3], 4294967264 }
 0x4af   :  { %537 = vsyncpa [#allocation3], 1 }

</bundles_post_ra>
